<compile_context>
chip_gen: v7x
topology: tpu7x:2x2x1
jax: 0.10.0
libtpu: 0.0.40
codegen_flags: <defaults>
</compile_context>

<pallas_src>
import jax
import jax.numpy as jnp
from jax.experimental import pallas as pl
from jax.experimental.pallas import tpu as pltpu


def _attention_kernel(enc_ref, hidp_ref, w1e_ref, w2_ref, out_ref):
    # enc_ref : (S, TB, H)  time-major encoder block (bf16 by default)
    # hidp_ref: (TB, H)     hidden @ W1[H:] + b1, precomputed in f32
    # w1e_ref : (H, H)      encoder half of W1 (x @ W layout)
    # w2_ref  : (H, 1)      attn2 weight as a column vector
    # out_ref : (TB, H)     context rows for this batch block (f32)
    S, TB, H = enc_ref.shape

    enc3 = enc_ref[...]                                   # (S, TB, H)
    enc_flat = enc3.reshape(S * TB, H)                    # layout no-op (TB % 8 == 0)

    # attn1 encoder half on the MXU: (S*TB, H) @ (H, H) -> f32
    pre = jnp.dot(enc_flat, w1e_ref[...], preferred_element_type=jnp.float32)
    pre = pre.reshape(S, TB, H) + hidp_ref[...]           # + (h @ W1_h + b1), bcast over S
    t = jnp.tanh(pre)                                     # EUP, f32

    # attn2 score on the MXU: (S*TB, H) @ (H, 1) -> (S*TB, 1).  b2 dropped
    # (softmax shift invariance).
    scores = jnp.dot(t.reshape(S * TB, H).astype(w2_ref.dtype), w2_ref[...],
                     preferred_element_type=jnp.float32).reshape(S, TB, 1)

    # Softmax over the sequence axis (leading dim -> elementwise over vregs).
    m = jnp.max(scores, axis=0, keepdims=True)            # (1, TB, 1)
    ex = jnp.exp(scores - m)                               # (S, TB, 1) f32
    denom = jnp.sum(ex, axis=0)                            # (TB, 1)    f32

    # Unnormalised context, then one exact reciprocal-multiply on (TB, 1).
    ctx_un = jnp.sum(ex * enc3, axis=0)                    # (TB, H) f32 (promote per-elem)
    out_ref[...] = (ctx_un * (1.0 / denom)).astype(out_ref.dtype)


def _round_up(x, m):
    return (x + m - 1) // m * m


def _choose_block(S, B, H, in_bytes):
    """Pick a sublane-aligned batch block TB and padded batch Bp.

    VMEM working set per batch row (bytes), conservative:
      enc block double-buffered  : 2 * S*H*in_bytes
      f32 intermediates          : ~3 * S*H*4   (pre, tanh, promoted alpha*enc)
      per-row vectors            :  small
    Budget 40 MiB -> fits v7x's 64 MiB VMEM with pipelining headroom.
    """
    per_row = S * H * (2 * in_bytes + 12) + 4 * H * 4
    budget = 40 * 1024 * 1024
    max_tb = max(8, min(1024, (budget // max(per_row, 1)) // 8 * 8))

    b8 = _round_up(B, 8)
    if b8 <= max_tb:
        if b8 >= 16:
            # Two even blocks so v7x's two TensorCores both get work.
            tb = _round_up(-(-b8 // 2), 8)
        else:
            tb = b8
    else:
        tb = max_tb
    bp = _round_up(b8, tb)
    return tb, bp


def attention_forward(hidden, encoder_outputs, w1, b1, w2, b2,
                      *, input_dtype=jnp.bfloat16, tb=None):
    """hidden: (B, H), encoder_outputs: (S, B, H) -> context: (B, 1, H).

    w1: (2H, H), b1: (1, H), w2: (1, H), b2: (1, 1)   (x @ W + b layout).
    input_dtype: dtype for the MXU / HBM-stream operands (default bf16 on all
      generations; pass jnp.float32 for full-precision, None to keep inputs as-is).
    tb: optional override for the batch block size (multiple of 8).
    b2 is accepted for interface parity but mathematically cannot affect the
    returned context (softmax shift invariance), so it is not used.
    """
    del b2  # shift-invariant under softmax; context unchanged
    S, B, H = encoder_outputs.shape

    # Hoist the hidden half of attn1 (incl. b1) out of the kernel: one dense
    # matmul over the whole batch, kept in f32.
    hid_proj = (hidden @ w1[H:, :] + b1).astype(jnp.float32)     # (B, H)
    w1_enc = w1[:H, :]                                           # (H, H)
    w2_col = w2.T                                                # (H, 1)

    enc_in = encoder_outputs
    if input_dtype is not None:
        enc_in = enc_in.astype(input_dtype)
        w1_enc = w1_enc.astype(input_dtype)
        w2_col = w2_col.astype(input_dtype)

    in_bytes = jnp.dtype(enc_in.dtype).itemsize
    w_bytes = jnp.dtype(w1_enc.dtype).itemsize

    if tb is None:
        TB, Bp = _choose_block(S, B, H, in_bytes)
    else:
        assert tb % 8 == 0, "tb must be a multiple of 8 (sublane tile)"
        TB = tb
        Bp = _round_up(B, TB)

    if Bp != B:
        enc_in = jnp.pad(enc_in, ((0, 0), (0, Bp - B), (0, 0)))
        hid_proj = jnp.pad(hid_proj, ((0, Bp - B), (0, 0)))

    cost = pl.CostEstimate(
        flops=int(2 * S * Bp * H * (H + 1) + 2 * S * Bp * H),
        transcendentals=int(S * Bp * H + S * Bp),
        bytes_accessed=int(S * Bp * H * in_bytes      # enc stream (dominant)
                           + Bp * H * 4 * 2           # hid_proj in + context out
                           + H * H * w_bytes + H * w_bytes),
    )

    out = pl.pallas_call(
        _attention_kernel,
        out_shape=jax.ShapeDtypeStruct((Bp, H), jnp.float32),
        grid_spec=pltpu.PrefetchScalarGridSpec(
            num_scalar_prefetch=0,
            grid=(Bp // TB,),
            in_specs=[
                # encoder outputs, time-major; strided DMA does the batch gather
                pl.BlockSpec((S, TB, H), lambda b: (0, b, 0)),
                # precomputed hidden projection (+ b1)
                pl.BlockSpec((TB, H), lambda b: (b, 0)),
                # encoder half of W1 (grid-invariant -> pipeline skips re-DMA)
                pl.BlockSpec((H, H), lambda b: (0, 0)),
                # attn2 weight as a column vector (grid-invariant)
                pl.BlockSpec((H, 1), lambda b: (0, 0)),
            ],
            out_specs=pl.BlockSpec((TB, H), lambda b: (b, 0)),
        ),
        compiler_params=pltpu.CompilerParams(
            dimension_semantics=("parallel",),
            vmem_limit_bytes=64 * 1024 * 1024,
        ),
        cost_estimate=cost,
    )(enc_in, hid_proj, w1_enc, w2_col)

    return out[:B, None, :]                                       # (B, 1, H)


def attention_reference(hidden, encoder_outputs, w1, b1, w2, b2):
    """Pure-JAX reference mirroring the PyTorch forward exactly."""
    S, B, H = encoder_outputs.shape
    h = jnp.broadcast_to(hidden[None, :, :], (S, B, H)).transpose(1, 0, 2)  # (B, S, H)
    enc = encoder_outputs.transpose(1, 0, 2)                                 # (B, S, H)
    inputs = jnp.concatenate([enc, h], axis=2).reshape(-1, 2 * H)            # (B*S, 2H)
    o = jnp.tanh(inputs @ w1 + b1) @ w2.T + b2[0, 0]                         # (B*S, 1)
    e = o.reshape(B, S)
    alpha = jax.nn.softmax(e, axis=1)
    context = jnp.einsum("bs,bsh->bh", alpha, enc)[:, None, :]               # (B, 1, H)
    return context


if __name__ == "__main__":
    key = jax.random.PRNGKey(0)

    def make_case(k, batch, seq_len, hidden_size):
        k1, k2, k3, k4, k5, k6 = jax.random.split(k, 6)
        w1 = jax.random.normal(k1, (2 * hidden_size, hidden_size), jnp.float32) * 0.1
        b1 = jax.random.normal(k2, (1, hidden_size), jnp.float32) * 0.1
        w2 = jax.random.normal(k3, (1, hidden_size), jnp.float32) * 0.1
        b2 = jax.random.normal(k4, (1, 1), jnp.float32) * 0.1
        hidden = jax.random.normal(k5, (batch, hidden_size), jnp.float32)
        enc = jax.random.normal(k6, (seq_len, batch, hidden_size), jnp.float32)
        return hidden, enc, w1, b1, w2, b2

    # Case 1: the small spec shapes (single batch block).
    # Case 2: exercises a 2-block "parallel" grid + batch padding.
    for (batch, seq_len, hsz) in [(2, 8, 32), (20, 12, 32)]:
        key, sub = jax.random.split(key)
        hidden, enc, w1, b1, w2, b2 = make_case(sub, batch, seq_len, hsz)
        ref = attention_reference(hidden, enc, w1, b1, w2, b2)

        # Default path: bf16 MXU / HBM-stream operands (f32 accumulate + softmax).
        ctx_bf16 = attention_forward(hidden, enc, w1, b1, w2, b2)
        jax.block_until_ready(ctx_bf16)
        assert ctx_bf16.shape == (batch, 1, hsz)
        assert jnp.allclose(ctx_bf16, ref, atol=3e-2, rtol=3e-2), (
            f"bf16 path mismatch vs reference for batch={batch}, seq={seq_len}")

        # Full-precision path.
        ctx_f32 = attention_forward(hidden, enc, w1, b1, w2, b2,
                                    input_dtype=jnp.float32)
        jax.block_until_ready(ctx_f32)
        assert ctx_f32.shape == (batch, 1, hsz)
        assert jnp.allclose(ctx_f32, ref, atol=5e-3, rtol=5e-3), (
            f"f32 path mismatch vs reference for batch={batch}, seq={seq_len}")

    print("KERNEL_OK")
</pallas_src>

<mosaic_0001>
module attributes {stable_mosaic.version = 11 : i64} {
  func.func @_attention_kernel(%arg0: i32, %arg1: memref<8x8x32xbf16, #tpu.memory_space<vmem>>, %arg2: memref<8x32xf32, #tpu.memory_space<vmem>>, %arg3: memref<32x32xbf16, #tpu.memory_space<vmem>>, %arg4: memref<32x1xbf16, #tpu.memory_space<vmem>>, %arg5: memref<8x32xf32, #tpu.memory_space<vmem>>) attributes {dimension_semantics = [#tpu.dimension_semantics<parallel>], iteration_bounds = array<i64: 1>, scalar_prefetch = 0 : i64, scratch_operands = 0 : i64, tpu.core_type = #tpu.core_type<tc>, window_params = [{transform_indices = @transform_0, window_bounds = array<i64: 8, 8, 32>}, {transform_indices = @transform_1, window_bounds = array<i64: 8, 32>}, {pipeline_mode = #tpu.pipeline_mode<synchronous>, transform_indices = @transform_2, window_bounds = array<i64: 32, 32>}, {pipeline_mode = #tpu.pipeline_mode<synchronous>, transform_indices = @transform_3, window_bounds = array<i64: 32, 1>}, {transform_indices = @transform_4, window_bounds = array<i64: 8, 32>}]} {
    %c0 = arith.constant 0 : index
    %c0_0 = arith.constant 0 : index
    %c0_1 = arith.constant 0 : index
    %0 = vector.load %arg1[%c0, %c0_0, %c0_1] : memref<8x8x32xbf16, #tpu.memory_space<vmem>>, vector<8x8x32xbf16>
    %1 = vector.shape_cast %0 : vector<8x8x32xbf16> to vector<64x32xbf16>
    %c0_2 = arith.constant 0 : index
    %c0_3 = arith.constant 0 : index
    %2 = vector.load %arg3[%c0_2, %c0_3] : memref<32x32xbf16, #tpu.memory_space<vmem>>, vector<32x32xbf16>
    %cst = arith.constant dense<0.000000e+00> : vector<64x32xf32>
    %3 = tpu.matmul %1, %2, %cst {dimension_numbers = #tpu.dot_dimension_numbers<[1], [0], [0], [1], [0, 0, 1, 1], [], []>} : vector<64x32xbf16>, vector<32x32xbf16>, vector<64x32xf32> -> vector<64x32xf32>
    %4 = vector.shape_cast %3 : vector<64x32xf32> to vector<8x8x32xf32>
    %c0_4 = arith.constant 0 : index
    %c0_5 = arith.constant 0 : index
    %5 = vector.load %arg2[%c0_4, %c0_5] : memref<8x32xf32, #tpu.memory_space<vmem>>, vector<8x32xf32>
    %6 = vector.shape_cast %5 : vector<8x32xf32> to vector<1x8x32xf32>
    %7 = vector.broadcast %6 : vector<1x8x32xf32> to vector<8x8x32xf32>
    %8 = arith.addf %4, %7 : vector<8x8x32xf32>
    %9 = math.tanh %8 : vector<8x8x32xf32>
    %10 = vector.shape_cast %9 : vector<8x8x32xf32> to vector<64x32xf32>
    %11 = arith.truncf %10 : vector<64x32xf32> to vector<64x32xbf16>
    %c0_6 = arith.constant 0 : index
    %c0_7 = arith.constant 0 : index
    %12 = vector.load %arg4[%c0_6, %c0_7] : memref<32x1xbf16, #tpu.memory_space<vmem>>, vector<32x1xbf16>
    %cst_8 = arith.constant dense<0.000000e+00> : vector<64x1xf32>
    %13 = tpu.matmul %11, %12, %cst_8 {dimension_numbers = #tpu.dot_dimension_numbers<[1], [0], [0], [1], [0, 0, 1, 1], [], []>} : vector<64x32xbf16>, vector<32x1xbf16>, vector<64x1xf32> -> vector<64x1xf32>
    %14 = vector.shape_cast %13 : vector<64x1xf32> to vector<8x8x1xf32>
    %cst_9 = arith.constant dense<0xFF800000> : vector<8x1xf32>
    %15 = vector.multi_reduction <maximumf>, %14, %cst_9 [0] : vector<8x8x1xf32> to vector<8x1xf32>
    %16 = vector.shape_cast %15 : vector<8x1xf32> to vector<1x8x1xf32>
    %17 = vector.broadcast %16 : vector<1x8x1xf32> to vector<8x8x1xf32>
    %18 = arith.subf %14, %17 : vector<8x8x1xf32>
    %19 = math.exp %18 : vector<8x8x1xf32>
    %cst_10 = arith.constant dense<0.000000e+00> : vector<8x1xf32>
    %20 = vector.multi_reduction <add>, %19, %cst_10 [0] : vector<8x8x1xf32> to vector<8x1xf32>
    %21 = arith.extf %0 : vector<8x8x32xbf16> to vector<8x8x32xf32>
    %22 = vector.broadcast %19 : vector<8x8x1xf32> to vector<8x8x32xf32>
    %23 = arith.mulf %22, %21 : vector<8x8x32xf32>
    %cst_11 = arith.constant dense<0.000000e+00> : vector<8x32xf32>
    %24 = vector.multi_reduction <add>, %23, %cst_11 [0] : vector<8x8x32xf32> to vector<8x32xf32>
    %cst_12 = arith.constant 1.000000e+00 : f32
    %25 = vector.broadcast %cst_12 : f32 to vector<8x1xf32>
    %26 = arith.divf %25, %20 : vector<8x1xf32>
    %27 = vector.broadcast %26 : vector<8x1xf32> to vector<8x32xf32>
    %28 = arith.mulf %24, %27 : vector<8x32xf32>
    %c0_13 = arith.constant 0 : index
    %c0_14 = arith.constant 0 : index
    %29 = vector.load %arg5[%c0_13, %c0_14] : memref<8x32xf32, #tpu.memory_space<vmem>>, vector<8x32xf32>
    tpu.vector_store %arg5[%c0_13, %c0_14], %28 {strides = array<i32>} : memref<8x32xf32, #tpu.memory_space<vmem>>, vector<8x32xf32>,
    return
  }
  func.func @transform_0(%arg0: i32) -> (i32, i32, i32) {
    %c0_i32 = arith.constant 0 : i32
    %c0_i32_0 = arith.constant 0 : i32
    %c0_i32_1 = arith.constant 0 : i32
    return %c0_i32, %arg0, %c0_i32_0 : i32, i32, i32
  }
  func.func @transform_1(%arg0: i32) -> (i32, i32) {
    %c0_i32 = arith.constant 0 : i32
    %c0_i32_0 = arith.constant 0 : i32
    return %arg0, %c0_i32 : i32, i32
  }
  func.func @transform_2(%arg0: i32) -> (i32, i32) {
    %c0_i32 = arith.constant 0 : i32
    %c0_i32_0 = arith.constant 0 : i32
    %c0_i32_1 = arith.constant 0 : i32
    return %c0_i32, %c0_i32_0 : i32, i32
  }
  func.func @transform_3(%arg0: i32) -> (i32, i32) {
    %c0_i32 = arith.constant 0 : i32
    %c0_i32_0 = arith.constant 0 : i32
    %c0_i32_1 = arith.constant 0 : i32
    return %c0_i32, %c0_i32_0 : i32, i32
  }
  func.func @transform_4(%arg0: i32) -> (i32, i32) {
    %c0_i32 = arith.constant 0 : i32
    %c0_i32_0 = arith.constant 0 : i32
    return %arg0, %c0_i32 : i32, i32
  }
}

</mosaic_0001>

<bundles_post_ra>
// kernel: tpu_custom_call.1
= control target key start
LH: loop header
LB: loop body
LE: loop exit
PB: predicated region body
PF: predicated region fallthrough
CT: control target
= control target key end

     0   :  { %9 = vsyncpa [#allocation3], 0  ;;  %s855_s0 = inlined_call_operand.hbm [shape: bf16[8,8,32], index: 0, kind: input, shape index: {}]   ;;  %s856_s1 = inlined_call_operand.hbm [shape: f32[8,32], index: 1, kind: input, shape index: {}]   ;;  %s857_s2 = inlined_call_operand.hbm [shape: bf16[32,32], index: 2, kind: input, shape index: {}]   ;;  %s858_s3 = inlined_call_operand.hbm [shape: bf16[32,1], index: 3, kind: input, shape index: {}]   ;;  %s859_s4 = inlined_call_operand.hbm [shape: f32[8,32], index: 4, kind: output, shape index: {}]  }
   0x1   :  { %10 = vsyncpa [#allocation6], 0 }
   0x2   :  { %11 = vsyncpa [#allocation9], 0 }
   0x3   :  { %12 = vsyncpa [#allocation4], 0  ;;  %s686_s15 = smov [#allocation5]   ;;  %s687_s17 = smov [#allocation2]  }
   0x4   :  { %s31_s16 = sshll.u32 %s686_s15, 4  ;;  %s18_s18 = sshll.u32 %s687_s17, 4  ;;  %s32_s16 = int_to_ptr.vmem [resolvable:$true] %s31_s16  ;;  %s719_s18 = int_to_ptr.vmem [resolvable:$true] %s18_s18 }
   0x5   :  { %s568_s21 = scalar_lea.hbm %s856_s1, 128 }
   0x6   :  { %p569_p0 = scmp.ne.s32.totalorder %s856_s1, %s568_s21  ;;  %p572_p1 = scmp.lt.u32.totalorder %s568_s21, %s856_s1 }
   0x8   :  { %p574_p2 = pnand %p572_p1, %p569_p0 }
   0xa   :  { %577 = shalt.err (!%p574_p2)
}
   0xb   :  { %s578_s26 = scalar_lea.vmem %s32_s16, 128  ;;  %p583_p4 = scmp.lt.s32.totalorder %s32_s16, %s32_s16 }
   0xc   :  { %p579_p3 = scmp.ne.s32.totalorder %s32_s16, %s578_s26  ;;  %p584_p5 = scmp.lt.s32.totalorder %s578_s26, %s578_s26 }
   0xe   :  { %p585_p6 = por %p584_p5, %p583_p4 }
  0x10   :  { %p586_p7 = pnand %p585_p6, %p579_p3 }
  0x12   :  { %589 = shalt.err (!%p586_p7)
}
  0x13   :  { %34 = dma.hbm_to_vmem [thread:$0]  %s856_s1, 128, %s32_s16, [#allocation6]  }
  0x14   :  { %s590_s5 = scalar_lea.hbm %s855_s0, 512 }
  0x15   :  { %p591_p8 = scmp.ne.s32.totalorder %s855_s0, %s590_s5  ;;  %p594_p9 = scmp.lt.u32.totalorder %s590_s5, %s855_s0 }
  0x17   :  { %p596_p10 = pnand %p594_p9, %p591_p8 }
  0x19   :  { %599 = shalt.err (!%p596_p10)
}
  0x1a   :  { %s600_s10 = scalar_lea.vmem %s719_s18, 512  ;;  %p605_p12 = scmp.lt.s32.totalorder %s719_s18, %s719_s18 }
  0x1b   :  { %p601_p11 = scmp.ne.s32.totalorder %s719_s18, %s600_s10  ;;  %p606_p13 = scmp.lt.s32.totalorder %s600_s10, %s600_s10 }
  0x1d   :  { %p607_p0 = por %p606_p13, %p605_p12 }
  0x1f   :  { %p608_p1 = pnand %p607_p0, %p601_p11 }
  0x21   :  { %611 = shalt.err (!%p608_p1)
}
  0x22   :  { %s688_s1 = smov 64   ;;  %s689_s11 = smov 4  }
  0x23   :  { %24 = dma.hbm_to_vmem [thread:$0]  %s855_s0, 512, %s719_s18, [#allocation3], %s688_s1, %s688_s1, %s689_s11  }
  0x24   :  { %s690_s14 = smov [#allocation7]   ;;  %s691_s16 = smov [#allocation8]  }
  0x25   :  { %s40_s15 = sshll.u32 %s690_s14, 4  ;;  %s52_s17 = sshll.u32 %s691_s16, 4  ;;  %s41_s15 = int_to_ptr.vmem [resolvable:$true] %s40_s15  ;;  %s753_s17 = int_to_ptr.vmem [resolvable:$true] %s52_s17 }
  0x26   :  { %s612_s21 = scalar_lea.hbm %s857_s2, 256 }
  0x27   :  { %p613_p2 = scmp.ne.s32.totalorder %s857_s2, %s612_s21  ;;  %p616_p3 = scmp.lt.u32.totalorder %s612_s21, %s857_s2 }
  0x29   :  { %p618_p4 = pnand %p616_p3, %p613_p2 }
  0x2b   :  { %621 = shalt.err (!%p618_p4)
}
  0x2c   :  { %s622_s0 = scalar_lea.vmem %s41_s15, 256  ;;  %p627_p6 = scmp.lt.s32.totalorder %s41_s15, %s41_s15 }
  0x2d   :  { %p623_p5 = scmp.ne.s32.totalorder %s41_s15, %s622_s0  ;;  %p628_p7 = scmp.lt.s32.totalorder %s622_s0, %s622_s0 }
  0x2f   :  { %p629_p8 = por %p628_p7, %p627_p6 }
  0x31   :  { %p630_p9 = pnand %p629_p8, %p623_p5 }
  0x33   :  { %633 = shalt.err (!%p630_p9)
}
  0x34   :  { %46 = dma.hbm_to_vmem [thread:$0]  %s857_s2, 256, %s41_s15, [#allocation6], %s688_s1, %s688_s1, %s689_s11  }
  0x35   :  { %s634_s29 = scalar_lea.hbm %s858_s3, 256 }
  0x36   :  { %p635_p10 = scmp.ne.s32.totalorder %s858_s3, %s634_s29  ;;  %p638_p11 = scmp.lt.u32.totalorder %s634_s29, %s858_s3 }
  0x38   :  { %p640_p12 = pnand %p638_p11, %p635_p10 }
  0x3a   :  { %643 = shalt.err (!%p640_p12)
}
  0x3b   :  { %s644_s8 = scalar_lea.vmem %s753_s17, 256  ;;  %p649_p0 = scmp.lt.s32.totalorder %s753_s17, %s753_s17 }
  0x3c   :  { %p645_p13 = scmp.ne.s32.totalorder %s753_s17, %s644_s8  ;;  %p650_p1 = scmp.lt.s32.totalorder %s644_s8, %s644_s8 }
  0x3e   :  { %p651_p2 = por %p650_p1, %p649_p0 }
  0x40   :  { %p652_p3 = pnand %p651_p2, %p645_p13 }
  0x42   :  { %655 = shalt.err (!%p652_p3)
}
  0x43   :  { %58 = dma.hbm_to_vmem [thread:$0]  %s858_s3, 256, %s753_s17, [#allocation9], %s688_s1, %s688_s1, %s689_s11  }
  0x44   :  { %678 = dma.done.wait [#allocation3], 512  }
  0x45   :  { %679 = vsyncadd [#allocation3], 4294966784 }
  0x46   :  { %680 = dma.done.wait [#allocation6], 384  }
  0x47   :  { %681 = vsyncadd [#allocation6], 4294966912 }
  0x48   :  { %682 = dma.done.wait [#allocation9], 256  }
  0x49   :  { %683 = vsyncadd [#allocation9], 4294967040  ;;  %v522_v0 = vld [vmem:[#allocation7] sm:$0xff]   ;;  %v523_v1 = vld [vmem:[#allocation7 + $0x8] sm:$0xff]   ;;  %vm116_vm0 = vcmask 261120   ;;  %v692_v37 = vmov 0  }
  0x4a   :  { %488 = vmatprep.subr.bf16.mxu0 %v522_v0  ;;  %v790_v2 = vld [vmem:[#allocation2] sm:$0xff]   ;;  %v792_v3 = vld [vmem:[#allocation2 + $0x8] sm:$0xff]   ;;  %v794_v4 = vld [vmem:[#allocation2 + $0x10] sm:$0xff]   ;;  %521 = vset.pattern.permute.xlu1 %v692_v37  ;;  %vm308_vm1 = vcmask 7168   ;;  %s693_s3 = smov [#allocation10]  }
  0x4b   :  { %489 = vmatpush3.bf16.msra.mxu0 %v522_v0  ;;  %492 = vmatprep.mubr.msk.bf16.mxu0 %vm116_vm0, %v790_v2  ;;  %v802_v5 = vld [vmem:[#allocation2 + $0x18] sm:$0xff]   ;;  %v529_v7 = vld [vmem:[#allocation8 + $0x8] sm:$0xff]   ;;  %s449_s10 = sshll.u32 %s693_s3, 4  ;;  %s450_s10 = int_to_ptr.vmem [resolvable:$true] %s449_s10 }
  0x4c   :  { %490 = vmatprep.subr.bf16.mxu0 %v523_v1  ;;  %v528_v6 = vld [vmem:[#allocation8] sm:$0xff]   ;;  %v194_v8 = vld [vmem:[#allocation5] sm:$0xff]  ;;  %520 = vset.pattern.permute.xlu0 %v692_v37  ;;  %s656_s1 = scalar_lea.vmem %s450_s10, 128  ;;  %p661_p5 = scmp.lt.s32.totalorder %s450_s10, %s450_s10 }
  0x4d   :  { %500 = vmatprep.subr.bf16.mxu1 %v528_v6  ;;  %p657_p4 = scmp.ne.s32.totalorder %s450_s10, %s656_s1  ;;  %p662_p6 = scmp.lt.s32.totalorder %s656_s1, %s656_s1 }
  0x4e   :  { %501 = vmatpush3.bf16.msra.mxu1 %v528_v6 }
  0x4f   :  { %491 = vmatpush3.bf16.msra.mxu0 %v523_v1  ;;  %502 = vmatprep.subr.bf16.mxu1 %v529_v7  ;;  %p663_p7 = por %p662_p6, %p661_p5 }
  0x51   :  { %p664_p8 = pnand %p663_p7, %p657_p4 }
  0x52   :  { %493 = vmatmul.mubr.msk.bf16.vlgmr.msra.gmra.mrb[0].mxu0 %vm116_vm0, %v792_v3  ;;  %503 = vmatpush3.bf16.msra.mxu1 %v529_v7 }
  0x53   :  { %496 = vmatprep.mubr.msk.bf16.mxu0 %vm116_vm0, %v794_v4 }
  0x5a   :  { %497 = vmatmul.mubr.msk.bf16.gmra.mrb[4].mxu0 %vm116_vm0, %v802_v5 }
 0x125   :  { %v494_v9 = vpop.f32.mrb[0].mxu0 }
 0x126   :  { %v197_v10 = vadd.f32 %v494_v9, %v194_v8  ;;  %v163_v11 = vpop.f32.mrb[1].mxu0 }
 0x127   :  { %v195_v12 = vadd.f32 %v194_v8, %v163_v11  ;;  %v495_v13 = vpop.f32.mrb[2].mxu0 }
 0x128   :  { %534 = vtanh.f32 %v197_v10  ;;  %v198_v14 = vadd.f32 %v495_v13, %v194_v8  ;;  %v166_v15 = vpop.f32.mrb[3].mxu0 }
 0x129   :  { %536 = vtanh.f32 %v195_v12  ;;  %v196_v16 = vadd.f32 %v194_v8, %v166_v15 }
 0x12a   :  { %538 = vtanh.f32 %v198_v14 }
 0x12b   :  { %540 = vtanh.f32 %v196_v16 }
 0x12d   :  { %v498_v17 = vpop.f32.mrb[4].mxu0 }
 0x12e   :  { %v201_v18 = vadd.f32 %v498_v17, %v194_v8  ;;  %v179_v19 = vpop.f32.mrb[5].mxu0 }
 0x12f   :  { %v199_v20 = vadd.f32 %v194_v8, %v179_v19  ;;  %v499_v21 = vpop.f32.mrb[6].mxu0 }
 0x130   :  { %542 = vtanh.f32 %v201_v18  ;;  %v202_v22 = vadd.f32 %v499_v21, %v194_v8  ;;  %v182_v23 = vpop.f32.mrb[7].mxu0 }
 0x131   :  { %544 = vtanh.f32 %v199_v20  ;;  %v200_v24 = vadd.f32 %v194_v8, %v182_v23 }
 0x132   :  { %v535_v25 = vpop.eup %534  ;;  %546 = vtanh.f32 %v202_v22 }
 0x133   :  { %v537_v26 = vpop.eup %536  ;;  %548 = vtanh.f32 %v200_v24 }
 0x134   :  { %v539_v27 = vpop.eup %538 }
 0x135   :  { %v541_v28 = vpop.eup %540  ;;  %v212_v29 = vpack.c.bf16 %v539_v27, %v535_v25 }
 0x136   :  { %v211_v30 = vpack.c.bf16 %v541_v28, %v537_v26 }
 0x138   :  { %504 = vmatprep.mubr.msk.bf16.mxu1 %vm116_vm0, %v211_v30 }
 0x139   :  { %505 = vmatmul.mubr.msk.bf16.vlgmr.msra.gmra.mrb[0].mxu1 %vm116_vm0, %v212_v29 }
 0x13a   :  { %v543_v31 = vpop.eup %542 }
 0x13b   :  { %v545_v32 = vpop.eup %544 }
 0x13c   :  { %v547_v33 = vpop.eup %546 }
 0x13d   :  { %v549_v34 = vpop.eup %548  ;;  %v214_v35 = vpack.c.bf16 %v547_v33, %v543_v31 }
 0x13e   :  { %v213_v36 = vpack.c.bf16 %v549_v34, %v545_v32 }
 0x140   :  { %508 = vmatprep.mubr.msk.bf16.mxu1 %vm116_vm0, %v213_v36 }
 0x141   :  { %509 = vmatmul.mubr.msk.bf16.gmra.mrb[4].mxu1 %vm116_vm0, %v214_v35 }
 0x20c   :  { %v506_v38 = vpop.f32.mrb[0].mxu1 }
 0x20d   :  { %v277_v39 = vpop.f32.mrb[1].mxu1  ;;  %v311_v43 = vsel %vm308_vm1, %v506_v38, -inf }
 0x20e   :  { %v507_v40 = vpop.f32.mrb[2].mxu1  ;;  %v309_v46 = vsel %vm308_vm1, %v277_v39, -inf }
 0x20f   :  { %v280_v41 = vpop.f32.mrb[3].mxu1  ;;  %v312_v50 = vsel %vm308_vm1, %v507_v40, -inf }
 0x210   :  { %v310_v54 = vsel %vm308_vm1, %v280_v41, -inf }
 0x214   :  { %v510_v42 = vpop.f32.mrb[4].mxu1 }
 0x215   :  { %v317_v44 = vsel %vm308_vm1, %v510_v42, -inf  ;;  %v293_v45 = vpop.f32.mrb[5].mxu1 }
 0x216   :  { %v318_v47 = vmax.f32 %v311_v43, %v317_v44  ;;  %v313_v48 = vsel %vm308_vm1, %v293_v45, -inf  ;;  %v511_v49 = vpop.f32.mrb[6].mxu1  ;;  %v365_v44 = vunpack.c.l.bf16 %v792_v3 }
 0x217   :  { %v314_v51 = vmax.f32 %v309_v46, %v313_v48  ;;  %v319_v52 = vsel %vm308_vm1, %v511_v49, -inf  ;;  %v296_v53 = vpop.f32.mrb[7].mxu1 }
 0x218   :  { %v320_v55 = vmax.f32 %v312_v50, %v319_v52  ;;  %v315_v56 = vsel %vm308_vm1, %v296_v53, -inf  ;;  %v367_v52 = vunpack.c.l.bf16 %v794_v4 }
 0x219   :  { %v316_v57 = vmax.f32 %v310_v54, %v315_v56 }
 0x21a   :  { %v322_v58 = vmax.f32 %v318_v47, %v320_v55  ;;  %v366_v47 = vunpack.c.h.bf16 %v792_v3 }
 0x21b   :  { %v321_v59 = vmax.f32 %v314_v51, %v316_v57 }
 0x21d   :  { %v323_v60 = vmax.f32 %v321_v59, %v322_v58 }
 0x21f   :  { %v329_v61 = vsub.f32 %v296_v53, %v323_v60  ;;  %v326_v62 = vsub.f32 %v506_v38, %v323_v60  ;;  %v324_v63 = vsub.f32 %v277_v39, %v323_v60  ;;  %v325_v0 = vsub.f32 %v280_v41, %v323_v60 }
 0x220   :  { %v327_v1 = vsub.f32 %v507_v40, %v323_v60  ;;  %v328_v6 = vsub.f32 %v293_v45, %v323_v60  ;;  %v331_v7 = vsub.f32 %v511_v49, %v323_v60  ;;  %v330_v8 = vsub.f32 %v510_v42, %v323_v60 }
 0x221   :  { %v336_v9 = vmul.f32 1.442695, %v326_v62  ;;  %v332_v10 = vmul.f32 1.442695, %v324_v63  ;;  %v334_v11 = vmul.f32 1.442695, %v325_v0  ;;  %v363_v42 = vunpack.c.l.bf16 %v790_v2 }
 0x222   :  { %v338_v12 = vmul.f32 1.442695, %v327_v1  ;;  %v340_v13 = vmul.f32 1.442695, %v328_v6  ;;  %v342_v14 = vmul.f32 1.442695, %v329_v61  ;;  %v364_v45 = vunpack.c.h.bf16 %v790_v2 }
 0x223   :  { %550 = vpow2.f32 %v336_v9  ;;  %v344_v15 = vmul.f32 1.442695, %v330_v8  ;;  %v346_v16 = vmul.f32 1.442695, %v331_v7  ;;  %v368_v2 = vunpack.c.h.bf16 %v794_v4 }
 0x224   :  { %552 = vpow2.f32 %v332_v10  ;;  %v369_v1 = vunpack.c.l.bf16 %v802_v5  ;;  %v370_v9 = vunpack.c.h.bf16 %v802_v5 }
 0x225   :  { %554 = vpow2.f32 %v334_v11 }
 0x226   :  { %556 = vpow2.f32 %v338_v12 }
 0x227   :  { %558 = vpow2.f32 %v340_v13 }
 0x228   :  { %560 = vpow2.f32 %v342_v14 }
 0x229   :  { %562 = vpow2.f32 %v344_v15 }
 0x22a   :  { %564 = vpow2.f32 %v346_v16 }
 0x22d   :  { %v551_v17 = vpop.eup %550 }
 0x22e   :  { %v553_v18 = vpop.eup %552  ;;  %383 = vperm.xlu1 %521, %v551_v17   ;;  %v351_v24 = vsel %vm308_vm1, %v551_v17, 0.0 }
 0x22f   :  { %v555_v19 = vpop.eup %554  ;;  %373 = vperm.xlu0 %520, %v553_v18   ;;  %v348_v20 = vsel %vm308_vm1, %v553_v18, 0.0 }
 0x230   :  { %v349_v21 = vsel %vm308_vm1, %v555_v19, 0.0  ;;  %v557_v22 = vpop.eup %556 }
 0x231   :  { %v350_v23 = vadd.f32 %v349_v21, %v348_v20  ;;  %v559_v25 = vpop.eup %558  ;;  %v353_v27 = vsel %vm308_vm1, %v557_v22, 0.0 }
 0x232   :  { %388 = vperm.xlu1 %521, %v557_v22   ;;  %v561_v28 = vpop.eup %560  ;;  %v355_v30 = vsel %vm308_vm1, %v559_v25, 0.0 }
 0x233   :  { %v352_v26 = vadd.f32 %v351_v24, %v350_v23  ;;  %378 = vperm.xlu0 %520, %v555_v19   ;;  %v563_v31 = vpop.eup %562  ;;  %v357_v33 = vsel %vm308_vm1, %v561_v28, 0.0 }
 0x234   :  { %v565_v34 = vpop.eup %564  ;;  %v359_v36 = vsel %vm308_vm1, %v563_v31, 0.0 }
 0x235   :  { %v354_v29 = vadd.f32 %v353_v27, %v352_v26  ;;  %v361_v38 = vsel %vm308_vm1, %v565_v34, 0.0 }
 0x236   :  { %398 = vperm.xlu1 %521, %v561_v28  }
 0x237   :  { %393 = vperm.xlu0 %520, %v559_v25   ;;  %v356_v32 = vadd.f32 %v355_v30, %v354_v29 }
 0x239   :  { %v358_v35 = vadd.f32 %v357_v33, %v356_v32 }
 0x23a   :  { %408 = vperm.xlu1 %521, %v565_v34  }
 0x23b   :  { %403 = vperm.xlu0 %520, %v563_v31   ;;  %v360_v37 = vadd.f32 %v359_v36, %v358_v35 }
 0x23d   :  { %v362_v39 = vadd.f32 %v361_v38, %v360_v37 }
 0x23f   :  { %566 = vrcp.f32 %v362_v39 }
 0x249   :  { %v567_v40 = vpop.eup %566 }
 0x24a   :  { %438 = vperm.xlu0 %520, %v567_v40  }
 0x2ad   :  { %v384_v41 = vpop.permute.xlu1 %383 }
 0x2ae   :  { %v374_v43 = vpop.permute.xlu0 %373  ;;  %v413_v50 = vmul.f32 %v384_v41, %v365_v44 }
 0x2af   :  { %v411_v46 = vmul.f32 %v374_v43, %v363_v42 }
 0x2b0   :  { %v422_v58 = vsel %vm116_vm0, %v413_v50, 0.0 }
 0x2b1   :  { %v389_v48 = vpop.permute.xlu1 %388  ;;  %v419_v53 = vsel %vm116_vm0, %v411_v46, 0.0 }
 0x2b2   :  { %v379_v49 = vpop.permute.xlu0 %378  ;;  %v414_v54 = vmul.f32 %v389_v48, %v366_v47 }
 0x2b3   :  { %v412_v51 = vmul.f32 %v379_v49, %v364_v45 }
 0x2b4   :  { %v424_v61 = vsel %vm116_vm0, %v414_v54, 0.0 }
 0x2b5   :  { %v420_v55 = vsel %vm116_vm0, %v412_v51, 0.0  ;;  %v399_v3 = vpop.permute.xlu1 %398 }
 0x2b6   :  { %v421_v56 = vadd.f32 %v420_v55, %v419_v53  ;;  %v394_v57 = vpop.permute.xlu0 %393  ;;  %v416_v63 = vmul.f32 %v399_v3, %v368_v2 }
 0x2b7   :  { %v415_v59 = vmul.f32 %v394_v57, %v367_v52 }
 0x2b8   :  { %v423_v60 = vadd.f32 %v422_v58, %v421_v56  ;;  %v428_v8 = vsel %vm116_vm0, %v416_v63, 0.0 }
 0x2b9   :  { %v426_v0 = vsel %vm116_vm0, %v415_v59, 0.0  ;;  %v409_v11 = vpop.permute.xlu1 %408 }
 0x2ba   :  { %v425_v62 = vadd.f32 %v424_v61, %v423_v60  ;;  %v404_v7 = vpop.permute.xlu0 %403  ;;  %v418_v12 = vmul.f32 %v409_v11, %v370_v9 }
 0x2bb   :  { %v417_v10 = vmul.f32 %v404_v7, %v369_v1 }
 0x2bc   :  { %v427_v6 = vadd.f32 %v426_v0, %v425_v62  ;;  %v432_v15 = vsel %vm116_vm0, %v418_v12, 0.0 }
 0x2bd   :  { %v430_v13 = vsel %vm116_vm0, %v417_v10, 0.0 }
 0x2be   :  { %v429_v4 = vadd.f32 %v428_v8, %v427_v6 }
 0x2c0   :  { %v431_v14 = vadd.f32 %v430_v13, %v429_v4 }
 0x2c2   :  { %v433_v16 = vadd.f32 %v432_v15, %v431_v14 }
 0x2c9   :  { %v439_v17 = vpop.permute.xlu0 %438 }
 0x2ca   :  { %v441_v18 = vmul.f32 %v439_v17, %v433_v16 }
 0x2cc   :  { %442 = vst.msk [vmem:[#allocation10] sm:$0xff] %vm116_vm0, %v441_v18 }
 0x2cd   :  { %667 = shalt.err (!%p664_p8)
}
 0x2ce   :  { %s668_s13 = scalar_lea.hbm %s859_s4, 128 }
 0x2cf   :  { %p669_p9 = scmp.ne.s32.totalorder %s859_s4, %s668_s13  ;;  %p672_p10 = scmp.lt.u32.totalorder %s668_s13, %s859_s4 }
 0x2d1   :  { %p674_p11 = pnand %p672_p10, %p669_p9 }
 0x2d3   :  { %677 = shalt.err (!%p674_p11)
}
 0x2d4   :  { %452 = dma.vmem_to_hbm [thread:$0]  %s450_s10, 128, %s859_s4, [#allocation4]  }
 0x2d5   :  { %684 = dma.done.wait [#allocation4], 128  }
 0x2d6   :  { %685 = vsyncadd [#allocation4], 4294967168 }
 0x2d7   :  { %456 = vsyncpa [#allocation3], 1 }
 0x2d8   :  { %457 = vsyncpa [#allocation6], 1 }
 0x2d9   :  { %458 = vsyncpa [#allocation9], 1 }
 0x2da   :  { %459 = vsyncpa [#allocation4], 1 }

</bundles_post_ra>
